<compile_context>
chip_gen: v7x
topology: tpu7x:2x2x1
jax: 0.10.0
libtpu: 0.0.40
codegen_flags: <defaults>
</compile_context>

<pallas_src>
import functools

import jax
import jax.numpy as jnp
from jax.experimental import pallas as pl
from jax.experimental.pallas import tpu as pltpu

BN_EPS = 1e-5
LANE = 128


def _round_up(x, m):
    return (x + m - 1) // m * m


def _vmem_capacity_bytes():
    try:
        return int(pltpu.get_tpu_info().vmem_capacity_bytes)
    except Exception:
        return 64 << 20  # conservative default: v7x per-TensorCore VMEM


def _choose_block_k(input_dim, hidden_dim, bpe, target_bytes=4 << 20):
    """Largest multiple of 128 that divides input_dim with a <= target w1 block."""
    best = LANE
    for k in range(LANE, input_dim, LANE):
        if input_dim % k == 0 and k * hidden_dim * bpe <= target_bytes:
            best = k
    return best


# ----------------------------- kernels --------------------------------------


def _head_kernel(x_ref, w1_ref, b1_ref, w2_ref, b2_ref, out_ref, *, matmul_dtype):
    # In-kernel cast of x (VPU) hides under the MXU; fc1 accumulates in f32.
    x = x_ref[...].astype(matmul_dtype)
    h = jnp.dot(x, w1_ref[...], preferred_element_type=jnp.float32)
    h = jnp.maximum(h + b1_ref[...], 0.0)
    # BatchNorm1d (eval, running stats) and Dropout (identity in eval) are
    # already folded into w2/b2 by prepare_params().
    out = jnp.dot(h.astype(matmul_dtype), w2_ref[...],
                  preferred_element_type=jnp.float32)
    out_ref[...] = (out + b2_ref[...]).astype(out_ref.dtype)


def _head_kernel_ktiled(x_ref, w1_ref, b1_ref, w2_ref, b2_ref, out_ref, acc_ref,
                        *, matmul_dtype):
    # Grid = (batch tiles, K tiles); fc1 accumulated in an f32 VMEM scratch.
    k = pl.program_id(1)

    @pl.when(k == 0)
    def _():
        acc_ref[...] = jnp.zeros_like(acc_ref)

    x = x_ref[...].astype(matmul_dtype)
    acc_ref[...] += jnp.dot(x, w1_ref[...], preferred_element_type=jnp.float32)

    @pl.when(k == pl.num_programs(1) - 1)
    def _():
        h = jnp.maximum(acc_ref[...] + b1_ref[...], 0.0)
        out = jnp.dot(h.astype(matmul_dtype), w2_ref[...],
                      preferred_element_type=jnp.float32)
        out_ref[...] = (out + b2_ref[...]).astype(out_ref.dtype)


# --------------------------- parameter prep ---------------------------------


def prepare_params(params, *, matmul_dtype=jnp.bfloat16):
    """One-time parameter preparation (compute once, cache, reuse every call):
       * fold eval-mode BatchNorm1d into the second linear
         (w2' = scale * w2 row-wise, b2' = shift @ w2 + b2),
       * pad the class dimension to a lane-dense multiple of 128,
       * cast matmul operands to the MXU dtype; biases stay f32."""
    hidden_dim = params["w1"].shape[1]
    num_classes = params["w2"].shape[1]
    n_pad = _round_up(max(num_classes, 1), LANE)

    scale = params["gamma"] * jax.lax.rsqrt(params["running_var"] + BN_EPS)  # (1,H)
    shift = params["beta"] - params["running_mean"] * scale                  # (1,H)
    w2_fold = scale.reshape(-1, 1) * params["w2"]                            # (H,C)
    b2_fold = shift @ params["w2"] + params["b2"]                            # (1,C)

    w2p = jnp.zeros((hidden_dim, n_pad), jnp.float32).at[:, :num_classes].set(w2_fold)
    b2p = jnp.zeros((1, n_pad), jnp.float32).at[:, :num_classes].set(b2_fold)

    return {
        "w1": params["w1"].astype(matmul_dtype),
        "b1": params["b1"].astype(jnp.float32),
        "w2": w2p.astype(matmul_dtype),
        "b2": b2p.astype(jnp.float32),
        "num_classes": num_classes,
    }


# ------------------------------ forward -------------------------------------


def classification_head(features, prepared, *, block_b=None, block_k=None,
                        out_dtype=jnp.float32):
    """Eval-mode forward.  features: (B, input_dim) f32 -> (B, num_classes).

    `prepared` must come from prepare_params() and should be cached across calls
    (all BN folding / padding / casting is hoisted there)."""
    B, input_dim = features.shape
    w1, b1, w2, b2 = prepared["w1"], prepared["b1"], prepared["w2"], prepared["b2"]
    num_classes = prepared["num_classes"]
    hidden_dim = w1.shape[1]
    n_pad = w2.shape[1]
    assert w1.shape[0] == input_dim

    matmul_dtype = w1.dtype
    bpe_m = matmul_dtype.itemsize
    out_bpe = jnp.dtype(out_dtype).itemsize

    # ---- batch tile: multiple of 16 for bf16 (sublane packing), 128-aligned
    #      when big, and >=2 grid steps for B>128 so both v7x TCs get work. -----
    mult = 8 if bpe_m >= 4 else (16 if bpe_m == 2 else 32)
    if block_b is None:
        if B >= 128:
            block_b = min(512, _round_up(B, LANE))
            if B > 128:
                block_b = min(block_b, _round_up(pl.cdiv(B, 2), LANE))
        else:
            block_b = _round_up(B, mult)
    block_b = max(mult, _round_up(block_b, mult))

    # ---- K (input_dim) tiling fallback for large weights (v7x: 64 MiB VMEM) ----
    if block_k is None:
        if input_dim % LANE == 0 and input_dim * hidden_dim * bpe_m > (16 << 20):
            block_k = _choose_block_k(input_dim, hidden_dim, bpe_m)
        else:
            # TODO(synk): K-tiling for input_dim not a multiple of 128 would need
            # in-kernel masking of the ragged K block; keep w1 fully resident.
            block_k = input_dim
    assert input_dim % block_k == 0, "block_k must divide input_dim"
    num_k = input_dim // block_k
    k_tiled = num_k > 1
    if k_tiled:
        assert block_k % LANE == 0, "block_k must be a multiple of 128"

    # ---- honest VMEM budget (weights counted double-buffered worst case) -------
    vmem_cap = int(0.75 * _vmem_capacity_bytes())

    def _budget(bb):
        v = 2 * bb * block_k * 4                       # x tiles (f32), double-buffered
        v += bb * block_k * bpe_m                      # in-kernel cast copy of x
        v += 2 * block_k * hidden_dim * bpe_m          # w1 (worst case: 2 buffers)
        v += 2 * (hidden_dim * 4 + hidden_dim * n_pad * bpe_m + n_pad * 4)  # b1,w2,b2
        v += bb * hidden_dim * 4                       # fc1 f32 intermediate
        v += bb * hidden_dim * bpe_m                   # fc1 cast for second matmul
        v += 2 * bb * n_pad * out_bpe                  # out tiles, double-buffered
        if k_tiled:
            v += bb * hidden_dim * 4                   # f32 accumulator scratch
        return v

    while _budget(block_b) + (4 << 20) > vmem_cap and block_b > mult:
        block_b = max(mult, _round_up(block_b // 2, mult))
    vmem_limit = min(int(1.5 * _budget(block_b)) + (4 << 20), vmem_cap)

    grid_b = pl.cdiv(B, block_b)
    cost = pl.CostEstimate(
        flops=2 * B * (input_dim * hidden_dim + hidden_dim * n_pad),
        transcendentals=0,
        bytes_accessed=(B * input_dim * 4
                        + input_dim * hidden_dim * bpe_m
                        + hidden_dim * n_pad * bpe_m
                        + (hidden_dim + n_pad) * 4
                        + B * n_pad * out_bpe),
    )

    def _run(single_buffer_weights):
        # Constant-index weights/biases only need one VMEM buffer.
        def wspec(shape, index_map):
            if single_buffer_weights:
                return pl.BlockSpec(shape, index_map, pipeline_mode=pl.Buffered(1))
            return pl.BlockSpec(shape, index_map)

        if not k_tiled:
            grid = (grid_b,)
            in_specs = [
                pl.BlockSpec((block_b, input_dim), lambda i: (i, 0)),      # x tile (f32)
                wspec((input_dim, hidden_dim), lambda i: (0, 0)),          # w1 resident
                wspec((1, hidden_dim), lambda i: (0, 0)),                  # b1
                wspec((hidden_dim, n_pad), lambda i: (0, 0)),              # w2' (BN folded)
                wspec((1, n_pad), lambda i: (0, 0)),                       # b2'
            ]
            out_specs = pl.BlockSpec((block_b, n_pad), lambda i: (i, 0))
            scratch = []
            dims = ("parallel",)
            kernel = functools.partial(_head_kernel, matmul_dtype=matmul_dtype)
        else:
            grid = (grid_b, num_k)
            in_specs = [
                pl.BlockSpec((block_b, block_k), lambda i, k: (i, k)),     # x tile (f32)
                pl.BlockSpec((block_k, hidden_dim), lambda i, k: (k, 0)),  # w1 streamed
                wspec((1, hidden_dim), lambda i, k: (0, 0)),               # b1
                wspec((hidden_dim, n_pad), lambda i, k: (0, 0)),           # w2'
                wspec((1, n_pad), lambda i, k: (0, 0)),                    # b2'
            ]
            out_specs = pl.BlockSpec((block_b, n_pad), lambda i, k: (i, 0))
            scratch = [pltpu.VMEM((block_b, hidden_dim), jnp.float32)]
            dims = ("parallel", "arbitrary")
            kernel = functools.partial(_head_kernel_ktiled, matmul_dtype=matmul_dtype)

        return pl.pallas_call(
            kernel,
            out_shape=jax.ShapeDtypeStruct((B, n_pad), out_dtype),
            grid=grid,
            in_specs=in_specs,
            out_specs=out_specs,
            scratch_shapes=scratch,
            compiler_params=pltpu.CompilerParams(
                dimension_semantics=dims,
                vmem_limit_bytes=vmem_limit,
            ),
            cost_estimate=cost,
        )(features, w1, b1, w2, b2)

    try:
        out_padded = _run(True)
    except Exception:
        # pipeline_mode=pl.Buffered(1) not supported on this jax version; fall back
        # to default double-buffered weights (the VMEM budget already covers it).
        out_padded = _run(False)

    # Padded class columns carry zero weights/bias; slice them off.  (The 128-wide
    # padded write costs more bytes than num_classes needs; out_dtype=bf16 halves it.)
    return out_padded[:, :num_classes]


# ------------------------------ test utils ----------------------------------


def init_params(key, input_dim, hidden_dim, num_classes):
    """Deterministic synthetic parameters (shapes match the PyTorch module)."""
    k1, k2, k3, k4, kg, kb, km, kv = jax.random.split(key, 8)
    s1 = 1.0 / jnp.sqrt(input_dim)
    s2 = 1.0 / jnp.sqrt(hidden_dim)
    return {
        # Linear(input_dim, hidden_dim): stored transposed -> (in, out)
        "w1": jax.random.uniform(k1, (input_dim, hidden_dim), jnp.float32, -s1, s1),
        "b1": jax.random.uniform(k2, (1, hidden_dim), jnp.float32, -s1, s1),
        # BatchNorm1d(hidden_dim) -- non-trivial running stats to exercise folding
        "gamma": jax.random.uniform(kg, (1, hidden_dim), jnp.float32, 0.5, 1.5),
        "beta": 0.1 * jax.random.normal(kb, (1, hidden_dim), jnp.float32),
        "running_mean": 0.1 * jax.random.normal(km, (1, hidden_dim), jnp.float32),
        "running_var": jax.random.uniform(kv, (1, hidden_dim), jnp.float32, 0.5, 1.5),
        # Linear(hidden_dim, num_classes): stored transposed -> (in, out)
        "w2": jax.random.uniform(k3, (hidden_dim, num_classes), jnp.float32, -s2, s2),
        "b2": jax.random.uniform(k4, (1, num_classes), jnp.float32, -s2, s2),
    }


def _reference_f32(features, p):
    h = features @ p["w1"] + p["b1"]
    h = jnp.maximum(h, 0.0)
    h = (h - p["running_mean"]) * jax.lax.rsqrt(p["running_var"] + BN_EPS)
    h = h * p["gamma"] + p["beta"]
    return h @ p["w2"] + p["b2"]


if __name__ == "__main__":
    # Small shapes consistent with the module's forward: (B, input_dim)
    B, INPUT_DIM, HIDDEN_DIM, NUM_CLASSES = 48, 256, 128, 3

    key = jax.random.PRNGKey(0)
    k_x, k_p = jax.random.split(key)
    x = jax.random.normal(k_x, (B, INPUT_DIM), dtype=jnp.float32)
    params = init_params(k_p, INPUT_DIM, HIDDEN_DIM, NUM_CLASSES)

    ref = _reference_f32(x, params)

    # Parameter prep is done ONCE and reused (hoisted out of the per-call path).
    prep_f32 = prepare_params(params, matmul_dtype=jnp.float32)
    prep_bf16 = prepare_params(params)  # bf16 matmul operands (default perf config)

    # f32 matmul path, ragged batch (48 % 32 != 0 -> masked last block): tight check.
    out_f32 = classification_head(x, prep_f32, block_b=32)
    jax.block_until_ready(out_f32)
    assert out_f32.shape == (B, NUM_CLASSES)
    assert jnp.allclose(out_f32, ref, atol=1e-4, rtol=1e-4)

    # f32, forced K-tiled path (exercises the v7x large-weight fallback kernel).
    out_f32_k = classification_head(x, prep_f32, block_b=32, block_k=128)
    jax.block_until_ready(out_f32_k)
    assert jnp.allclose(out_f32_k, ref, atol=1e-4, rtol=1e-4)

    # bf16 matmul path (default configuration): loose check vs f32 reference.
    out_bf16 = classification_head(x, prep_bf16)
    jax.block_until_ready(out_bf16)
    assert out_bf16.shape == (B, NUM_CLASSES)
    assert jnp.allclose(out_bf16, ref, atol=5e-2, rtol=5e-2)

    print("KERNEL_OK")
</pallas_src>

<mosaic_0001>
module attributes {stable_mosaic.version = 11 : i64} {
  func.func @_head_kernel(%arg0: i32, %arg1: memref<32x256xf32, #tpu.memory_space<vmem>>, %arg2: memref<256x128xf32, #tpu.memory_space<vmem>>, %arg3: memref<1x128xf32, #tpu.memory_space<vmem>>, %arg4: memref<128x128xf32, #tpu.memory_space<vmem>>, %arg5: memref<1x128xf32, #tpu.memory_space<vmem>>, %arg6: memref<32x128xf32, #tpu.memory_space<vmem>>) attributes {dimension_semantics = [#tpu.dimension_semantics<parallel>], iteration_bounds = array<i64: 2>, scalar_prefetch = 0 : i64, scratch_operands = 0 : i64, tpu.core_type = #tpu.core_type<tc>, window_params = [{transform_indices = @transform_0, window_bounds = array<i64: 32, 256>}, {pipeline_mode = #tpu.pipeline_mode<synchronous>, transform_indices = @transform_1, window_bounds = array<i64: 256, 128>}, {pipeline_mode = #tpu.pipeline_mode<synchronous>, transform_indices = @transform_2, window_bounds = array<i64: 1, 128>}, {pipeline_mode = #tpu.pipeline_mode<synchronous>, transform_indices = @transform_3, window_bounds = array<i64: 128, 128>}, {pipeline_mode = #tpu.pipeline_mode<synchronous>, transform_indices = @transform_4, window_bounds = array<i64: 1, 128>}, {transform_indices = @transform_5, window_bounds = array<i64: 32, 128>}]} {
    %c0 = arith.constant 0 : index
    %c0_0 = arith.constant 0 : index
    %0 = vector.load %arg1[%c0, %c0_0] : memref<32x256xf32, #tpu.memory_space<vmem>>, vector<32x256xf32>
    %c0_1 = arith.constant 0 : index
    %c0_2 = arith.constant 0 : index
    %1 = vector.load %arg2[%c0_1, %c0_2] : memref<256x128xf32, #tpu.memory_space<vmem>>, vector<256x128xf32>
    %cst = arith.constant dense<0.000000e+00> : vector<32x128xf32>
    %2 = tpu.matmul %0, %1, %cst {dimension_numbers = #tpu.dot_dimension_numbers<[1], [0], [0], [1], [0, 0, 1, 1], [], []>} : vector<32x256xf32>, vector<256x128xf32>, vector<32x128xf32> -> vector<32x128xf32>
    %c0_3 = arith.constant 0 : index
    %c0_4 = arith.constant 0 : index
    %3 = vector.load %arg3[%c0_3, %c0_4] : memref<1x128xf32, #tpu.memory_space<vmem>>, vector<1x128xf32>
    %4 = vector.broadcast %3 : vector<1x128xf32> to vector<32x128xf32>
    %5 = arith.addf %2, %4 : vector<32x128xf32>
    %cst_5 = arith.constant 0.000000e+00 : f32
    %6 = vector.broadcast %cst_5 : f32 to vector<32x128xf32>
    %7 = arith.maximumf %5, %6 : vector<32x128xf32>
    %c0_6 = arith.constant 0 : index
    %c0_7 = arith.constant 0 : index
    %8 = vector.load %arg4[%c0_6, %c0_7] : memref<128x128xf32, #tpu.memory_space<vmem>>, vector<128x128xf32>
    %cst_8 = arith.constant dense<0.000000e+00> : vector<32x128xf32>
    %9 = tpu.matmul %7, %8, %cst_8 {dimension_numbers = #tpu.dot_dimension_numbers<[1], [0], [0], [1], [0, 0, 1, 1], [], []>} : vector<32x128xf32>, vector<128x128xf32>, vector<32x128xf32> -> vector<32x128xf32>
    %c0_9 = arith.constant 0 : index
    %c0_10 = arith.constant 0 : index
    %10 = vector.load %arg5[%c0_9, %c0_10] : memref<1x128xf32, #tpu.memory_space<vmem>>, vector<1x128xf32>
    %11 = vector.broadcast %10 : vector<1x128xf32> to vector<32x128xf32>
    %12 = arith.addf %9, %11 : vector<32x128xf32>
    %c0_11 = arith.constant 0 : index
    %c0_12 = arith.constant 0 : index
    %13 = vector.load %arg6[%c0_11, %c0_12] : memref<32x128xf32, #tpu.memory_space<vmem>>, vector<32x128xf32>
    tpu.vector_store %arg6[%c0_11, %c0_12], %12 {strides = array<i32>} : memref<32x128xf32, #tpu.memory_space<vmem>>, vector<32x128xf32>,
    return
  }
  func.func @transform_0(%arg0: i32) -> (i32, i32) {
    %c0_i32 = arith.constant 0 : i32
    %c0_i32_0 = arith.constant 0 : i32
    return %arg0, %c0_i32 : i32, i32
  }
  func.func @transform_1(%arg0: i32) -> (i32, i32) {
    %c0_i32 = arith.constant 0 : i32
    %c0_i32_0 = arith.constant 0 : i32
    %c0_i32_1 = arith.constant 0 : i32
    return %c0_i32, %c0_i32_0 : i32, i32
  }
  func.func @transform_2(%arg0: i32) -> (i32, i32) {
    %c0_i32 = arith.constant 0 : i32
    %c0_i32_0 = arith.constant 0 : i32
    %c0_i32_1 = arith.constant 0 : i32
    return %c0_i32, %c0_i32_0 : i32, i32
  }
  func.func @transform_3(%arg0: i32) -> (i32, i32) {
    %c0_i32 = arith.constant 0 : i32
    %c0_i32_0 = arith.constant 0 : i32
    %c0_i32_1 = arith.constant 0 : i32
    return %c0_i32, %c0_i32_0 : i32, i32
  }
  func.func @transform_4(%arg0: i32) -> (i32, i32) {
    %c0_i32 = arith.constant 0 : i32
    %c0_i32_0 = arith.constant 0 : i32
    %c0_i32_1 = arith.constant 0 : i32
    return %c0_i32, %c0_i32_0 : i32, i32
  }
  func.func @transform_5(%arg0: i32) -> (i32, i32) {
    %c0_i32 = arith.constant 0 : i32
    %c0_i32_0 = arith.constant 0 : i32
    return %arg0, %c0_i32 : i32, i32
  }
}

module attributes {stable_mosaic.version = 11 : i64} {
  func.func @_head_kernel(%arg0: i32, %arg1: memref<32x256xf32, #tpu.memory_space<vmem>>, %arg2: memref<256x128xf32, #tpu.memory_space<vmem>>, %arg3: memref<1x128xf32, #tpu.memory_space<vmem>>, %arg4: memref<128x128xf32, #tpu.memory_space<vmem>>, %arg5: memref<1x128xf32, #tpu.memory_space<vmem>>, %arg6: memref<32x128xf32, #tpu.memory_space<vmem>>) attributes {dimension_semantics = [#tpu.dimension_semantics<parallel>], iteration_bounds = array<i64: 2>, scalar_prefetch = 0 : i64, scratch_operands = 0 : i64, tpu.core_type = #tpu.core_type<tc>, window_params = [{transform_indices = @transform_0, window_bounds = array<i64: 32, 256>}, {pipeline_mode = #tpu.pipeline_mode<synchronous>, transform_indices = @transform_1, window_bounds = array<i64: 256, 128>}, {pipeline_mode = #tpu.pipeline_mode<synchronous>, transform_indices = @transform_2, window_bounds = array<i64: 1, 128>}, {pipeline_mode = #tpu.pipeline_mode<synchronous>, transform_indices = @transform_3, window_bounds = array<i64: 128, 128>}, {pipeline_mode = #tpu.pipeline_mode<synchronous>, transform_indices = @transform_4, window_bounds = array<i64: 1, 128>}, {transform_indices = @transform_5, window_bounds = array<i64: 32, 128>}]} {
    %c0 = arith.constant 0 : index
    %c0_0 = arith.constant 0 : index
    %0 = vector.load %arg1[%c0, %c0_0] : memref<32x256xf32, #tpu.memory_space<vmem>>, vector<32x256xf32>
    %c0_1 = arith.constant 0 : index
    %c0_2 = arith.constant 0 : index
    %1 = vector.load %arg2[%c0_1, %c0_2] : memref<256x128xf32, #tpu.memory_space<vmem>>, vector<256x128xf32>
    %cst = arith.constant dense<0.000000e+00> : vector<32x128xf32>
    %2 = tpu.matmul %0, %1, %cst {dimension_numbers = #tpu.dot_dimension_numbers<[1], [0], [0], [1], [0, 0, 1, 1], [], []>} : vector<32x256xf32>, vector<256x128xf32>, vector<32x128xf32> -> vector<32x128xf32>
    %c0_3 = arith.constant 0 : index
    %c0_4 = arith.constant 0 : index
    %3 = vector.load %arg3[%c0_3, %c0_4] : memref<1x128xf32, #tpu.memory_space<vmem>>, vector<1x128xf32>
    %4 = vector.broadcast %3 : vector<1x128xf32> to vector<32x128xf32>
    %5 = arith.addf %2, %4 : vector<32x128xf32>
    %cst_5 = arith.constant 0.000000e+00 : f32
    %6 = vector.broadcast %cst_5 : f32 to vector<32x128xf32>
    %7 = arith.maximumf %5, %6 : vector<32x128xf32>
    %c0_6 = arith.constant 0 : index
    %c0_7 = arith.constant 0 : index
    %8 = vector.load %arg4[%c0_6, %c0_7] : memref<128x128xf32, #tpu.memory_space<vmem>>, vector<128x128xf32>
    %cst_8 = arith.constant dense<0.000000e+00> : vector<32x128xf32>
    %9 = tpu.matmul %7, %8, %cst_8 {dimension_numbers = #tpu.dot_dimension_numbers<[1], [0], [0], [1], [0, 0, 1, 1], [], []>} : vector<32x128xf32>, vector<128x128xf32>, vector<32x128xf32> -> vector<32x128xf32>
    %c0_9 = arith.constant 0 : index
    %c0_10 = arith.constant 0 : index
    %10 = vector.load %arg5[%c0_9, %c0_10] : memref<1x128xf32, #tpu.memory_space<vmem>>, vector<1x128xf32>
    %11 = vector.broadcast %10 : vector<1x128xf32> to vector<32x128xf32>
    %12 = arith.addf %9, %11 : vector<32x128xf32>
    %c0_11 = arith.constant 0 : index
    %c0_12 = arith.constant 0 : index
    %13 = vector.load %arg6[%c0_11, %c0_12] : memref<32x128xf32, #tpu.memory_space<vmem>>, vector<32x128xf32>
    tpu.vector_store %arg6[%c0_11, %c0_12], %12 {strides = array<i32>} : memref<32x128xf32, #tpu.memory_space<vmem>>, vector<32x128xf32>,
    return
  }
  func.func @transform_0(%arg0: i32) -> (i32, i32) {
    %c0_i32 = arith.constant 0 : i32
    %c0_i32_0 = arith.constant 0 : i32
    return %arg0, %c0_i32 : i32, i32
  }
  func.func @transform_1(%arg0: i32) -> (i32, i32) {
    %c0_i32 = arith.constant 0 : i32
    %c0_i32_0 = arith.constant 0 : i32
    %c0_i32_1 = arith.constant 0 : i32
    return %c0_i32, %c0_i32_0 : i32, i32
  }
  func.func @transform_2(%arg0: i32) -> (i32, i32) {
    %c0_i32 = arith.constant 0 : i32
    %c0_i32_0 = arith.constant 0 : i32
    %c0_i32_1 = arith.constant 0 : i32
    return %c0_i32, %c0_i32_0 : i32, i32
  }
  func.func @transform_3(%arg0: i32) -> (i32, i32) {
    %c0_i32 = arith.constant 0 : i32
    %c0_i32_0 = arith.constant 0 : i32
    %c0_i32_1 = arith.constant 0 : i32
    return %c0_i32, %c0_i32_0 : i32, i32
  }
  func.func @transform_4(%arg0: i32) -> (i32, i32) {
    %c0_i32 = arith.constant 0 : i32
    %c0_i32_0 = arith.constant 0 : i32
    %c0_i32_1 = arith.constant 0 : i32
    return %c0_i32, %c0_i32_0 : i32, i32
  }
  func.func @transform_5(%arg0: i32) -> (i32, i32) {
    %c0_i32 = arith.constant 0 : i32
    %c0_i32_0 = arith.constant 0 : i32
    return %arg0, %c0_i32 : i32, i32
  }
}

</mosaic_0001>

<bundles_post_ra>
// kernel: tpu_custom_call.1
= control target key start
LH: loop header
LB: loop body
LE: loop exit
PB: predicated region body
PF: predicated region fallthrough
CT: control target
= control target key end

     0   :  { %10 = vsyncpa [#allocation3], 0  ;;  %s1375_s0 = inlined_call_operand.hbm [shape: f32[48,256], index: 0, kind: input, shape index: {}]   ;;  %s1376_s1 = inlined_call_operand.hbm [shape: f32[256,128], index: 1, kind: input, shape index: {}]   ;;  %s1377_s2 = inlined_call_operand.vmem [shape: f32[1,128], index: 2, kind: input, shape index: {}]   ;;  %s1378_s3 = inlined_call_operand.hbm [shape: f32[128,128], index: 3, kind: input, shape index: {}]   ;;  %s1379_s4 = inlined_call_operand.vmem [shape: f32[1,128], index: 4, kind: input, shape index: {}]   ;;  %s1380_s5 = inlined_call_operand.hbm [shape: f32[48,128], index: 5, kind: output, shape index: {}]  }
   0x1   :  { %12 = vsyncpa [#allocation3 + $0x1], 0 }
   0x2   :  { %13 = vsyncpa [#allocation6], 0 }
   0x3   :  { %14 = vsyncpa [#allocation4], 0 }
   0x4   :  { %16 = vsyncpa [#allocation4 + $0x1], 0  ;;  %s1113_s18 = smov 0   ;;  %s1115_s19 = smov 0  }
   0x5   :  { %s1117_s20 = smov 0   ;;  %s1119_s21 = smov 0  }
   0x6 LB: > { %s1134_s22 = sadd.s32 4294967295, %s1071_s21   ;;  %s651_s23 = sadd.s32 4294967294, %s1071_s21   ;;  %s1071_s21 = sphi %s1119_s21, %s1402_s21   ;;  %s1067_s20 = sphi %s1117_s20, %s1401_s20   ;;  %s1063_s19 = sphi %s1115_s19, %s1400_s19   ;;  %s1059_s18 = sphi %s1113_s18, %s1399_s18  }
   0x7   : > { %s1138_s24 = sadd.s32 1, %s1071_s21   ;;  %s29_s25 = sadd.s32 1, %s1067_s20 }
   0x8   : > { %s26_s26 = ssub.s32 %s1071_s21, %s1138_s24  ;;  %p36_p0 = scmp.ne.s32.totalorder %s1067_s20, %s1063_s19 }
   0x9   : > { %p27_p1 = scmp.eq.s32.totalorder %s26_s26, 0  ;;  %p37_p2 = scmp.eq.s32.totalorder %s1071_s21, 0 }
   0xa   : > { %p42_p3 = scmp.ne.s32.totalorder %s1063_s19, %s1059_s18  ;;  %p1381_p4 = scmp.eq.s32.totalorder %s1134_s22, 0 }
   0xb   : > { %s1150_s27 = scalar_select %p27_p1, %s1067_s20, %s29_s25  }
   0xc   : > { %p1152_p5 = por %p37_p2, %p36_p0  ;;  %p1158_p6 = por %p1381_p4, %p42_p3 }
   0xd   : > { %1384 = sst [smem:[#allocation12_spill]] %s1150_s27  ;;  %p150_p7 = scmp.eq.s32.totalorder %s1134_s22, 1 }
   0xe   : > { %s1385_s28 = scalar_select %p1152_p5, 1, 0 }
   0xf   : > { %s1386_s29 = scalar_select %p1158_p6, 1, 0 }
  0x10   : > { %p156_p8 = scmp.eq.s32.totalorder %s651_s23, 1  ;;  %p652_p9 = scmp.ge.s32.totalorder %s1071_s21, 1 }
  0x11   : > { %p163_p10 = scmp.lt.s32.totalorder %s1071_s21, 3  ;;  %p1165_p11 = por %p150_p7, %p36_p0 }
  0x12   : > { %p1169_p12 = por %p156_p8, %p42_p3  ;;  %s1073_s8 = smov [#allocation5]  }
  0x13   : > { %s1387_s30 = scalar_select %p1165_p11, 1, 0 }
  0x14   : > { %s1388_s6 = scalar_select %p1169_p12, 1, 0 }
  0x15   : > { %p1173_p13 = pnand %p652_p9, %p163_p10  ;;  %s175_s9 = sshll.u32 %s1073_s8, 4  ;;  %s176_s9 = int_to_ptr.vmem [resolvable:$true] %s175_s9 }
  0x16   : > { %s1074_s11 = smov [#allocation7]   ;;  %s917_s15 = scalar_lea.hbm %s1376_s1, 4096 }
  0x17   : > { %s1389_s7 = scalar_select %p1173_p13, 1, 0 }
  0x18   : > { %p861_p1 = pneg %p1173_p13  ;;  %s191_s12 = sshll.u32 %s1074_s11, 4  ;;  %s1185_s12 = int_to_ptr.vmem [resolvable:$true] %s191_s12 }
  0x19   : > { %p918_p0 = scmp.ne.s32.totalorder %s1376_s1, %s917_s15  ;;  %p924_p9 = scmp.lt.u32.totalorder %s917_s15, %s1376_s1 }
  0x1a   : > { %p1181_p2 = pnand %p861_p1, %p1381_p4 }
  0x1c   : > { %p919_p3 = pneg %p1181_p2 }
  0x1e   : > { %p920_p7 = pnand %p919_p3, %p918_p0 }
  0x20   : > { %p921_p8 = pneg %p920_p7 }
  0x22   : > { %p926_p10 = pnand %p924_p9, %p921_p8 }
  0x24   : > { %929 = shalt.err (!%p926_p10)
}
  0x25   : > { %s930_s26 = scalar_lea.vmem %s176_s9, 4096  ;;  %p938_p11 = scmp.lt.s32.totalorder %s176_s9, %s176_s9 }
  0x26   : > { %p931_p1 = scmp.ne.s32.totalorder %s176_s9, %s930_s26  ;;  %p939_p6 = scmp.lt.s32.totalorder %s930_s26, %s930_s26 }
  0x28   : > { %p933_p4 = pnand %p931_p1, %p919_p3  ;;  %p940_p13 = por %p939_p6, %p938_p11 }
  0x2a   : > { %p934_p12 = pneg %p933_p4 }
  0x2c   : > { %p941_p5 = pnand %p940_p13, %p934_p12 }
  0x2e   : > { %944 = shalt.err (!%p941_p5)
}
  0x2f   : > { %s1075_s8 = smov 128   ;;  %s1076_s11 = smov 8  }
  0x30   : > { %864 = dma.hbm_to_vmem [thread:$0]  (!%p1181_p2), %s1376_s1, 4096, %s176_s9, [#allocation6], %s1075_s8, %s1075_s8, %s1076_s11  }
  0x31   : > { %s945_s17 = scalar_lea.hbm %s1378_s3, 2048 }
  0x32   : > { %p946_p4 = scmp.ne.s32.totalorder %s1378_s3, %s945_s17  ;;  %p952_p11 = scmp.lt.u32.totalorder %s945_s17, %s1378_s3 }
  0x34   : > { %p948_p5 = pnand %p946_p4, %p919_p3 }
  0x36   : > { %p949_p6 = pneg %p948_p5 }
  0x38   : > { %p954_p12 = pnand %p952_p11, %p949_p6 }
  0x3a   : > { %957 = shalt.err (!%p954_p12)
}
  0x3b   : > { %s958_s9 = scalar_lea.vmem %s1185_s12, 2048  ;;  %p966_p8 = scmp.lt.s32.totalorder %s1185_s12, %s1185_s12 }
  0x3c   : > { %p959_p13 = scmp.ne.s32.totalorder %s1185_s12, %s958_s9  ;;  %p967_p9 = scmp.lt.s32.totalorder %s958_s9, %s958_s9 }
  0x3e   : > { %p961_p0 = pnand %p959_p13, %p919_p3  ;;  %p968_p10 = por %p967_p9, %p966_p8 }
  0x40   : > { %p962_p7 = pneg %p961_p0 }
  0x42   : > { %p969_p1 = pnand %p968_p10, %p962_p7 }
  0x44   : > { %972 = shalt.err (!%p969_p1)
}
  0x45   : > { %867 = dma.hbm_to_vmem [thread:$0]  (!%p1181_p2), %s1378_s3, 2048, %s1185_s12, [#allocation6], %s1075_s8, %s1075_s8, %s1076_s11  }
  0x46   : > { %p655_p4 = scmp.ge.s32.totalorder %s1071_s21, 2 }
  0x47   : > { %p1391_p3 = scmp.ne.s32.totalorder (!%p655_p4), %s1385_s28, 0 }
  0x48   : > { %204 = sbr.rel (%p655_p4) target bundleno = 114 (0x72), region = 32 }
  0x4f   : > { %207 = sbr.rel (!%p1391_p3) target bundleno = 114 (0x72), region = 36  ;;  %s208_s14 = sand.u32 (%p1391_p3), 1, %s1067_s20  }
  0x50   : > { %s657_s15 = sshll.u32 (%p1391_p3), %s1071_s21, 2  ;;  %s656_s16 = sshll.u32 (%p1391_p3), %s208_s14, 6 }
  0x51   : > { %s214_s17 = ssub.s32 (%p1391_p3), 6, %s657_s15  ;;  %s1244_s8 = scalar_lea.sflag (%p1391_p3), [#allocation3], %s208_s14 }
  0x52   : > { %p215_p5 = scmp.lt.s32.totalorder (%p1391_p3), %s214_s17, 4  ;;  %s212_s11 = scalar_lea.vmem (%p1391_p3), [#allocation2], %s656_s16 }
  0x56   : > { %s1404_s17 = smov (!%p215_p5, %s214_s17), 4 }
  0x57   : > { %s1241_s10 = sshll.u32 %s1404_s17, 8 }
  0x58   : > { %s220_s12 = ssub.s32 1024, %s1241_s10 }
  0x59   : > { %221 = vsyncadd %s1244_s8, %s220_s12  ;;  %p660_p2 = scmp.ne.s32.totalorder %s1241_s10, 0  ;;  %s683_s28 = sshll.u32 %s1071_s21, 10 }
  0x5a   : > { %s1252_s26 = scalar_lea.hbm %s1375_s0, %s683_s28  ;;  %s227_s9 = sshll.u32 %s212_s11, 4  ;;  %s1254_s9 = int_to_ptr.vmem [resolvable:$true] %s227_s9 }
  0x5b   : > { %s973_s27 = scalar_lea.hbm %s1252_s26, %s1241_s10  ;;  %s977_s15 = scalar_lea.hbm %s1375_s0, 1536 }
  0x5c   : > { %p974_p6 = scmp.ne.s32.totalorder %s1252_s26, %s973_s27  ;;  %p978_p13 = scmp.lt.u32.totalorder %s1252_s26, %s1375_s0 }
  0x5d   : > { %p979_p0 = scmp.lt.u32.totalorder %s977_s15, %s973_s27  ;;  %p981_p8 = scmp.lt.u32.totalorder %s973_s27, %s1252_s26 }
  0x5e   : > { %p975_p11 = pnand %p974_p6, %p660_p2 }
  0x5f   : > { %p980_p7 = por %p979_p0, %p978_p13 }
  0x60   : > { %p976_p12 = pneg %p975_p11 }
  0x61   : > { %p982_p9 = por %p981_p8, %p980_p7 }
  0x63   : > { %p983_p10 = pnand %p982_p9, %p976_p12 }
  0x65   : > { %986 = shalt.err (!%p983_p10)
}
  0x66   : > { %s987_s12 = scalar_lea.vmem %s1254_s9, %s1241_s10  ;;  %s1077_s11 = smov [#allocation2]  }
  0x67   : > { %p988_p1 = scmp.ne.s32.totalorder %s1254_s9, %s987_s12  ;;  %s991_s28 = sshll.u32 %s1077_s11, 4  ;;  %s992_s28 = int_to_ptr.vmem [resolvable:$false] %s991_s28 }
  0x68   : > { %s993_s23 = scalar_lea.vmem %s992_s28, 2048  ;;  %p994_p6 = scmp.lt.s32.totalorder %s1254_s9, %s992_s28 }
  0x69   : > { %p989_p3 = pnand %p988_p1, %p660_p2  ;;  %p995_p11 = scmp.lt.s32.totalorder %s993_s23, %s987_s12 }
  0x6b   : > { %p990_p5 = pneg %p989_p3  ;;  %p996_p13 = por %p995_p11, %p994_p6 }
  0x6d   : > { %p997_p0 = pnand %p996_p13, %p990_p5 }
  0x6f   : > { %1000 = shalt.err (!%p997_p0)
}
  0x70   : > { %s1078_s25 = smov 256   ;;  %s1079_s27 = smov 16  }
  0x71   : > { %233 = dma.hbm_to_vmem [thread:$0]  (%p660_p2), %s1252_s26, %s1241_s10, %s1254_s9, %s1244_s8, %s1078_s25, %s1078_s25, %s1079_s27  }
  0x72 PF: > { %p1392_p12 = scmp.ne.s32.totalorder %s1389_s7, 0 }
  0x73   : > { %s1284_s13 = sand.u32 (!%p1392_p12), 1, %s1063_s19   ;;  %p1393_p7 = scmp.ne.s32.totalorder (!%p1392_p12), %s1386_s29, 0 }
  0x74   : > { %239 = sbr.rel (%p1392_p12) target bundleno = 637 (0x27d), region = 40  ;;  %s666_s14 = sshll.u32 (!%p1392_p12), %s1284_s13, 6 }
  0x75   : > { %s242_s15 = scalar_lea.sflag (!%p1392_p12), [#allocation3], %s1284_s13  ;;  %s1288_s16 = scalar_lea.vmem (!%p1392_p12), [#allocation2], %s666_s14 }
  0x7b   : > { %1046 = dma.done.wait (%p1393_p7), %s242_s15, 1024  }
  0x7c   : > { %1048 = vsyncadd (%p1393_p7), %s242_s15, 4294966272  ;;  %p1394_p2 = scmp.eq.s32.totalorder %s1134_s22, 0 }
  0x7e   : > { %1050 = dma.done.wait (%p1394_p2), [#allocation6], 6144   ;;  %p1395_p8 = pmov %p1394_p2 }
  0x7f   : > { %v315_v0 = vld [vmem:[#allocation5 + $0x80] sm:$0xff]  ;;  %v316_v1 = vld [vmem:[#allocation5 + $0x88] sm:$0xff]  ;;  %v317_v5 = vld [vmem:[#allocation5 + $0x90] sm:$0xff]  ;;  %s669_s10 = sshll.u32 %s1284_s13, 5  ;;  %s540_s17 = scalar_lea.sflag [#allocation4], %s1284_s13 }
  0x80   : > { %1052 = vsyncadd (%p1395_p8), [#allocation6], 4294961152  ;;  %v299_v2 = vld [vmem:[#allocation5] sm:$0xff]  ;;  %v787_v3 = vpack.c.bf16 %v316_v1, %v315_v0  ;;  %v300_v4 = vld [vmem:[#allocation5 + $0x8] sm:$0xff]  ;;  %s279_s9 = scalar_lea.vmem [#allocation8], %s669_s10  ;;  %p1396_p9 = scmp.ne.s32.totalorder %s1387_s30, 0 }
  0x81   : > { %v318_v6 = vld [vmem:[#allocation5 + $0x98] sm:$0xff]  ;;  %v789_v7 = vpack.c.bf16 %v300_v4, %v299_v2  ;;  %v301_v9 = vld [vmem:[#allocation5 + $0x10] sm:$0xff]  ;;  %v319_v11 = vld [vmem:[#allocation5 + $0xa0] sm:$0xff]  ;;  %s673_s12 = sshll.u32 (%p1396_p9), %s1134_s22, 2 }
  0x82   : > { %v791_v8 = vpack.c.bf16 %v318_v6, %v317_v5  ;;  %v302_v10 = vld [vmem:[#allocation5 + $0x18] sm:$0xff]  ;;  %788 = vmatprep.subr.bf16.mxu0 %v787_v3  ;;  %v320_v12 = vld [vmem:[#allocation5 + $0xa8] sm:$0xff]  ;;  %v303_v15 = vld [vmem:[#allocation5 + $0x20] sm:$0xff]  ;;  %s548_s11 = ssub.s32 (%p1396_p9), 6, %s673_s12 }
  0x83   : > { %790 = vmatpush3.bf16.msra.mxu0 %v789_v7  ;;  %v793_v13 = vpack.c.bf16 %v302_v10, %v301_v9  ;;  %v795_v14 = vpack.c.bf16 %v320_v12, %v319_v11  ;;  %v304_v16 = vld [vmem:[#allocation5 + $0x28] sm:$0xff]  ;;  %v321_v17 = vld [vmem:[#allocation5 + $0xb0] sm:$0xff]  ;;  %v322_v18 = vld [vmem:[#allocation5 + $0xb8] sm:$0xff]  ;;  %p549_p10 = scmp.lt.s32.totalorder (%p1396_p9), %s548_s11, 4 }
  0x84   : > { %792 = vmatprep.subr.bf16.mxu0 %v791_v8  ;;  %v797_v19 = vpack.c.bf16 %v304_v16, %v303_v15  ;;  %v799_v20 = vpack.c.bf16 %v322_v18, %v321_v17  ;;  %v305_v21 = vld [vmem:[#allocation5 + $0x30] sm:$0xff]  ;;  %v306_v22 = vld [vmem:[#allocation5 + $0x38] sm:$0xff]  ;;  %v323_v23 = vld [vmem:[#allocation5 + $0xc0] sm:$0xff] }
  0x85   : > { %v324_v24 = vld [vmem:[#allocation5 + $0xc8] sm:$0xff]  ;;  %v801_v26 = vpack.c.bf16 %v306_v22, %v305_v21  ;;  %v307_v27 = vld [vmem:[#allocation5 + $0x40] sm:$0xff]  ;;  %v325_v30 = vld [vmem:[#allocation5 + $0xd0] sm:$0xff] }
  0x86   : > { %v292_v25 = vld [vmem:[%s1288_s16 + $0x8] sm:$0xff]  ;;  %v803_v29 = vpack.c.bf16 %v324_v24, %v323_v23  ;;  %v427_v31 = vld [vmem:[#allocation7] sm:$0xff]  ;;  %v326_v33 = vld [vmem:[#allocation5 + $0xd8] sm:$0xff] }
  0x87   : > { %794 = vmatpush3.bf16.msra.mxu0 %v793_v13  ;;  %402 = vmatprep.mubr.f32.mxu0 %v292_v25  ;;  %v308_v28 = vld [vmem:[#allocation5 + $0x48] sm:$0xff]  ;;  %v429_v35 = vld [vmem:[#allocation7 + $0x10] sm:$0xff]  ;;  %v430_v36 = vld [vmem:[#allocation7 + $0x18] sm:$0xff]  ;;  %v807_v41 = vpack.c.bf16 %v326_v33, %v325_v30 }
  0x88   : > { %796 = vmatprep.subr.bf16.mxu0 %v795_v14  ;;  %v428_v32 = vld [vmem:[#allocation7 + $0x8] sm:$0xff]  ;;  %v823_v37 = vpack.c.bf16 %v430_v36, %v429_v35  ;;  %v431_v38 = vld [vmem:[#allocation7 + $0x20] sm:$0xff]  ;;  %v805_v40 = vpack.c.bf16 %v308_v28, %v307_v27  ;;  %v309_v42 = vld [vmem:[#allocation5 + $0x50] sm:$0xff] }
  0x89   : > { %v819_v34 = vpack.c.bf16 %v428_v32, %v427_v31  ;;  %v432_v39 = vld [vmem:[#allocation7 + $0x28] sm:$0xff]  ;;  %v310_v43 = vld [vmem:[#allocation5 + $0x58] sm:$0xff]  ;;  %v327_v44 = vld [vmem:[#allocation5 + $0xe0] sm:$0xff] }
  0x8a   : > { %v328_v45 = vld [vmem:[#allocation5 + $0xe8] sm:$0xff]  ;;  %v827_v46 = vpack.c.bf16 %v432_v39, %v431_v38  ;;  %v433_v47 = vld [vmem:[#allocation7 + $0x30] sm:$0xff]  ;;  %v434_v48 = vld [vmem:[#allocation7 + $0x38] sm:$0xff]  ;;  %v809_v49 = vpack.c.bf16 %v310_v43, %v309_v42 }
  0x8b   : > { %798 = vmatpush3.bf16.msra.mxu0 %v797_v19  ;;  %820 = vmatprep.subr.bf16.mxu1 %v819_v34  ;;  %v811_v50 = vpack.c.bf16 %v328_v45, %v327_v44  ;;  %v311_v51 = vld [vmem:[#allocation5 + $0x60] sm:$0xff]  ;;  %v312_v52 = vld [vmem:[#allocation5 + $0x68] sm:$0xff]  ;;  %v329_v53 = vld [vmem:[#allocation5 + $0xf0] sm:$0xff]  ;;  %v831_v55 = vpack.c.bf16 %v434_v48, %v433_v47 }
  0x8c   : > { %800 = vmatprep.subr.bf16.mxu0 %v799_v20  ;;  %822 = vmatpush3.bf16.msra.mxu1 %v819_v34  ;;  %v330_v54 = vld [vmem:[#allocation5 + $0xf8] sm:$0xff]  ;;  %v435_v56 = vld [vmem:[#allocation7 + $0x40] sm:$0xff]  ;;  %v436_v57 = vld [vmem:[#allocation7 + $0x48] sm:$0xff]  ;;  %v813_v58 = vpack.c.bf16 %v312_v52, %v311_v51 }
  0x8d   : > { %824 = vmatprep.subr.bf16.mxu1 %v823_v37  ;;  %v815_v59 = vpack.c.bf16 %v330_v54, %v329_v53  ;;  %v313_v60 = vld [vmem:[#allocation5 + $0x70] sm:$0xff]  ;;  %v314_v61 = vld [vmem:[#allocation5 + $0x78] sm:$0xff]  ;;  %v835_v62 = vpack.c.bf16 %v436_v57, %v435_v56  ;;  %v291_v0 = vld [vmem:[%s1288_s16] sm:$0xff] }
  0x8e   : > { %v817_v63 = vpack.c.bf16 %v314_v61, %v313_v60  ;;  %v294_v1 = vld [vmem:[%s1288_s16 + $0x18] sm:$0xff]  ;;  %v293_v2 = vld [vmem:[%s1288_s16 + $0x10] sm:$0xff]  ;;  %v296_v3 = vld [vmem:[%s1288_s16 + $0x28] sm:$0xff] }
  0x8f   : > { %802 = vmatpush3.bf16.msra.mxu0 %v801_v26  ;;  %v295_v4 = vld [vmem:[%s1288_s16 + $0x20] sm:$0xff]  ;;  %v298_v5 = vld [vmem:[%s1288_s16 + $0x38] sm:$0xff]  ;;  %v297_v6 = vld [vmem:[%s1288_s16 + $0x30] sm:$0xff] }
  0x90   : > { %804 = vmatprep.subr.bf16.mxu0 %v803_v29  ;;  %826 = vmatpush3.bf16.msra.mxu1 %v823_v37  ;;  %v437_v7 = vld [vmem:[#allocation7 + $0x50] sm:$0xff]  ;;  %v438_v8 = vld [vmem:[#allocation7 + $0x58] sm:$0xff]  ;;  %v439_v10 = vld [vmem:[#allocation7 + $0x60] sm:$0xff] }
  0x91   : > { %828 = vmatprep.subr.bf16.mxu1 %v827_v46  ;;  %v839_v9 = vpack.c.bf16 %v438_v8, %v437_v7  ;;  %v440_v11 = vld [vmem:[#allocation7 + $0x68] sm:$0xff]  ;;  %v441_v13 = vld [vmem:[#allocation7 + $0x70] sm:$0xff]  ;;  %v442_v14 = vld [vmem:[#allocation7 + $0x78] sm:$0xff] }
  0x92   : > { %v843_v12 = vpack.c.bf16 %v440_v11, %v439_v10  ;;  %v847_v15 = vpack.c.bf16 %v442_v14, %v441_v13  ;;  %v670_v18 = vld [vmem:[%s1377_s2] ss:$0 sm:$0xff] }
  0x93   : > { %806 = vmatpush3.bf16.msra.mxu0 %v805_v40  ;;  %v671_v37 = vld [vmem:[%s1379_s4] ss:$0 sm:$0xff] }
  0x94   : > { %808 = vmatprep.subr.bf16.mxu0 %v807_v41  ;;  %830 = vmatpush3.bf16.msra.mxu1 %v827_v46 }
  0x95   : > { %832 = vmatprep.subr.bf16.mxu1 %v831_v55 }
  0x97   : > { %810 = vmatpush3.bf16.msra.mxu0 %v809_v49 }
  0x98   : > { %812 = vmatprep.subr.bf16.mxu0 %v811_v50  ;;  %834 = vmatpush3.bf16.msra.mxu1 %v831_v55 }
  0x99   : > { %836 = vmatprep.subr.bf16.mxu1 %v835_v62 }
  0x9b   : > { %814 = vmatpush3.bf16.msra.mxu0 %v813_v58 }
  0x9c   : > { %816 = vmatprep.subr.bf16.mxu0 %v815_v59  ;;  %838 = vmatpush3.bf16.msra.mxu1 %v835_v62 }
  0x9d   : > { %840 = vmatprep.subr.bf16.mxu1 %v839_v9 }
  0x9f   : > { %818 = vmatpush3.bf16.msra.mxu0 %v817_v63 }
  0xa0   : > { %842 = vmatpush3.bf16.msra.mxu1 %v839_v9 }
  0xa1   : > { %844 = vmatprep.subr.bf16.mxu1 %v843_v12 }
  0xa2   : > { %403 = vmatmul.mubr.f32.vlgmr.msra.gmra.mrb[0].mxu0 %v291_v0 }
  0xa3   : > { %407 = vmatprep.mubr.f32.mxu0 %v294_v1 }
  0xa4   : > { %846 = vmatpush3.bf16.msra.mxu1 %v843_v12 }
  0xa5   : > { %848 = vmatprep.subr.bf16.mxu1 %v847_v15 }
  0xa6   : > { %408 = vmatmul.mubr.f32.gmra.mrb[2].mxu0 %v293_v2 }
  0xa7   : > { %412 = vmatprep.mubr.f32.mxu0 %v296_v3 }
  0xa8   : > { %850 = vmatpush3.bf16.msra.mxu1 %v847_v15 }
  0xaa   : > { %413 = vmatmul.mubr.f32.gmra.mrb[4].mxu0 %v295_v4 }
  0xab   : > { %417 = vmatprep.mubr.f32.mxu0 %v298_v5 }
  0xae   : > { %418 = vmatmul.mubr.f32.gmra.mrb[6].mxu0 %v297_v6 }
 0x175   : > { %v717_v16 = vpop.f32.mrb[0].mxu0 }
 0x176   : > { %v718_v17 = vpop.f32.mrb[1].mxu0 }
 0x177   : > { %v719_v19 = vadd.f32 %v718_v17, %v717_v16 }
 0x179   : > { %v720_v20 = vpop.f32.mrb[2].mxu0  ;;  %v405_v21 = vadd.f32 %v719_v19, %v670_v18 }
 0x17a   : > { %v721_v22 = vpop.f32.mrb[3].mxu0 }
 0x17b   : > { %v722_v23 = vadd.f32 %v721_v22, %v720_v20  ;;  %v423_v24 = vmax.f32 %v405_v21, 0.0 }
 0x17d   : > { %v410_v25 = vadd.f32 %v722_v23, %v670_v18  ;;  %v723_v26 = vpop.f32.mrb[4].mxu0  ;;  %781 = vmatprep.mubr.f32.mxu1 %v423_v24 }
 0x17e   : > { %v724_v27 = vpop.f32.mrb[5].mxu0 }
 0x17f   : > { %v424_v28 = vmax.f32 %v410_v25, 0.0  ;;  %v725_v29 = vadd.f32 %v724_v27, %v723_v26 }
 0x181   : > { %v415_v30 = vadd.f32 %v725_v29, %v670_v18  ;;  %v726_v31 = vpop.f32.mrb[6].mxu0  ;;  %782 = vmatmul.mubr.f32.vlgmr.msra.gmra.mrb[0].mxu1 %v424_v28 }
 0x182   : > { %v727_v32 = vpop.f32.mrb[7].mxu0 }
 0x183   : > { %v425_v33 = vmax.f32 %v415_v30, 0.0  ;;  %v728_v34 = vadd.f32 %v727_v32, %v726_v31 }
 0x185   : > { %v420_v35 = vadd.f32 %v728_v34, %v670_v18  ;;  %784 = vmatprep.mubr.f32.mxu1 %v425_v33 }
 0x187   : > { %v426_v36 = vmax.f32 %v420_v35, 0.0 }
 0x189   : > { %785 = vmatmul.mubr.f32.gmra.mrb[2].mxu1 %v426_v36 }
 0x254   : > { %v783_v38 = vpop.f32.mrb[0].mxu1 }
 0x255   : > { %v522_v39 = vadd.f32 %v783_v38, %v671_v37  ;;  %v516_v40 = vpop.f32.mrb[1].mxu1 }
 0x256   : > { %v517_v41 = vadd.f32 %v671_v37, %v516_v40 }
 0x257   : > { %536 = vst [vmem:[%s279_s9 + $0x8] sm:$0xff] %v522_v39 }
 0x258   : > { %535 = vst [vmem:[%s279_s9] sm:$0xff] %v517_v41 }
 0x25a   : > { %546 = sbr.rel (!%p1396_p9) target bundleno = 637 (0x27d), region = 56 }
 0x25c   : > { %v786_v42 = vpop.f32.mrb[2].mxu1 }
 0x25d   : > { %v532_v43 = vadd.f32 %v786_v42, %v671_v37  ;;  %v526_v44 = vpop.f32.mrb[3].mxu1 }
 0x25e   : > { %v527_v45 = vadd.f32 %v671_v37, %v526_v44 }
 0x25f   : > { %538 = vst [vmem:[%s279_s9 + $0x18] sm:$0xff] %v532_v43 }
 0x260   : > { %537 = vst [vmem:[%s279_s9 + $0x10] sm:$0xff] %v527_v45 }
 0x261   : > { %s1406_s11 = smov (!%p549_p10, %s548_s11), 4 }
 0x262   : > { %s1317_s28 = sshll.u32 %s1406_s11, 7 }
 0x263   : > { %s553_s23 = ssub.s32 512, %s1317_s28 }
 0x264   : > { %554 = vsyncadd %s540_s17, %s553_s23  ;;  %p675_p1 = scmp.ne.s32.totalorder %s1317_s28, 0  ;;  %s684_s25 = sshll.u32 %s1134_s22, 9 }
 0x265   : > { %s1327_s14 = scalar_lea.hbm %s1380_s5, %s684_s25  ;;  %s559_s15 = sshll.u32 %s279_s9, 4  ;;  %s1329_s15 = int_to_ptr.vmem [resolvable:$true] %s559_s15 }
 0x266   : > { %s1001_s16 = scalar_lea.vmem %s1329_s15, %s1317_s28  ;;  %s1080_s29 = smov [#allocation8]  }
 0x267   : > { %p1002_p3 = scmp.ne.s32.totalorder %s1329_s15, %s1001_s16  ;;  %s1005_s7 = sshll.u32 %s1080_s29, 4  ;;  %s1006_s7 = int_to_ptr.vmem [resolvable:$false] %s1005_s7 }
 0x268   : > { %s1007_s22 = scalar_lea.vmem %s1006_s7, 1024  ;;  %p1008_p11 = scmp.lt.s32.totalorder %s1329_s15, %s1006_s7 }
 0x269   : > { %p1003_p5 = pnand %p1002_p3, %p675_p1  ;;  %p1009_p13 = scmp.lt.s32.totalorder %s1007_s22, %s1001_s16 }
 0x26b   : > { %p1004_p6 = pneg %p1003_p5  ;;  %p1010_p0 = por %p1009_p13, %p1008_p11 }
 0x26d   : > { %p1011_p12 = pnand %p1010_p0, %p1004_p6 }
 0x26f   : > { %1014 = shalt.err (!%p1011_p12)
}
 0x270   : > { %s1015_s10 = scalar_lea.hbm %s1327_s14, %s1317_s28  ;;  %s1019_s9 = scalar_lea.hbm %s1380_s5, 768 }
 0x271   : > { %p1016_p7 = scmp.ne.s32.totalorder %s1327_s14, %s1015_s10  ;;  %p1020_p9 = scmp.lt.u32.totalorder %s1327_s14, %s1380_s5 }
 0x272   : > { %p1021_p10 = scmp.lt.u32.totalorder %s1019_s9, %s1015_s10  ;;  %p1023_p5 = scmp.lt.u32.totalorder %s1015_s10, %s1327_s14 }
 0x273   : > { %p1017_p2 = pnand %p1016_p7, %p675_p1 }
 0x274   : > { %p1022_p3 = por %p1021_p10, %p1020_p9 }
 0x275   : > { %p1018_p8 = pneg %p1017_p2 }
 0x276   : > { %p1024_p6 = por %p1023_p5, %p1022_p3 }
 0x278   : > { %p1025_p11 = pnand %p1024_p6, %p1018_p8 }
 0x27a   : > { %1028 = shalt.err (!%p1025_p11)
}
 0x27b   : > { %s1081_s23 = smov 128   ;;  %s1082_s25 = smov 8  }
 0x27c   : > { %565 = dma.vmem_to_hbm [thread:$0]  (%p675_p1), %s1329_s15, %s1317_s28, %s1327_s14, %s540_s17, %s1081_s23, %s1081_s23, %s1082_s25  }
 0x27d PF: > { %s574_s30 = sand.u32 1, %s1059_s18   ;;  %p1397_p13 = scmp.ne.s32.totalorder %s1388_s6, 0 }
 0x27e   : > { %s575_s27 = scalar_lea.sflag [#allocation4], %s574_s30 }
 0x27f   : > { %p869_p0 = pnand %p655_p4, %p1397_p13 }
 0x281   : > { %1054 = dma.done.wait (!%p869_p0), %s575_s27, 512  }
 0x282   : > { %1056 = vsyncadd (!%p869_p0), %s575_s27, 4294966784  ;;  %s1398_s16 = sld [smem:[#allocation12_spill]]  ;;  %p19_p12 = scmp.ge.s32.totalorder %s1138_s24, 4  }
 0x283   : > { %s1399_s18 = smov %s1063_s19  ;;  %s1400_s19 = smov %s1067_s20 }
 0x284   : > { %s1402_s21 = smov %s1138_s24  ;;  %21 = sbr.rel (!%p19_p12) target bundleno = 6 (0x6), region = 93 }
 0x288   : > { %s1401_s20 = smov %s1398_s16 }
 0x28b   :  { %580 = vsyncpa [#allocation3], 1 }
 0x28c   :  { %582 = vsyncpa [#allocation3 + $0x1], 1 }
 0x28d   :  { %583 = vsyncpa [#allocation6], 1 }
 0x28e   :  { %584 = vsyncpa [#allocation4], 1 }
 0x28f   :  { %586 = vsyncpa [#allocation4 + $0x1], 1 }

// kernel: tpu_custom_call.1
= control target key start
LH: loop header
LB: loop body
LE: loop exit
PB: predicated region body
PF: predicated region fallthrough
CT: control target
= control target key end

     0   :  { %10 = vsyncpa [#allocation3], 0  ;;  %s1375_s0 = inlined_call_operand.hbm [shape: f32[48,256], index: 0, kind: input, shape index: {}]   ;;  %s1376_s1 = inlined_call_operand.hbm [shape: f32[256,128], index: 1, kind: input, shape index: {}]   ;;  %s1377_s2 = inlined_call_operand.vmem [shape: f32[1,128], index: 2, kind: input, shape index: {}]   ;;  %s1378_s3 = inlined_call_operand.hbm [shape: f32[128,128], index: 3, kind: input, shape index: {}]   ;;  %s1379_s4 = inlined_call_operand.vmem [shape: f32[1,128], index: 4, kind: input, shape index: {}]   ;;  %s1380_s5 = inlined_call_operand.hbm [shape: f32[48,128], index: 5, kind: output, shape index: {}]  }
   0x1   :  { %12 = vsyncpa [#allocation3 + $0x1], 0 }
   0x2   :  { %13 = vsyncpa [#allocation6], 0 }
   0x3   :  { %14 = vsyncpa [#allocation4], 0 }
   0x4   :  { %16 = vsyncpa [#allocation4 + $0x1], 0  ;;  %s1113_s18 = smov 0   ;;  %s1115_s19 = smov 0  }
   0x5   :  { %s1117_s20 = smov 0   ;;  %s1119_s21 = smov 0  }
   0x6 LB: > { %s1134_s22 = sadd.s32 4294967295, %s1071_s21   ;;  %s651_s23 = sadd.s32 4294967294, %s1071_s21   ;;  %s1071_s21 = sphi %s1119_s21, %s1402_s21   ;;  %s1067_s20 = sphi %s1117_s20, %s1401_s20   ;;  %s1063_s19 = sphi %s1115_s19, %s1400_s19   ;;  %s1059_s18 = sphi %s1113_s18, %s1399_s18  }
   0x7   : > { %s1138_s24 = sadd.s32 1, %s1071_s21   ;;  %s29_s25 = sadd.s32 1, %s1067_s20 }
   0x8   : > { %s26_s26 = ssub.s32 %s1071_s21, %s1138_s24  ;;  %p36_p0 = scmp.ne.s32.totalorder %s1067_s20, %s1063_s19 }
   0x9   : > { %p27_p1 = scmp.eq.s32.totalorder %s26_s26, 0  ;;  %p37_p2 = scmp.eq.s32.totalorder %s1071_s21, 0 }
   0xa   : > { %p42_p3 = scmp.ne.s32.totalorder %s1063_s19, %s1059_s18  ;;  %p1381_p4 = scmp.eq.s32.totalorder %s1134_s22, 0 }
   0xb   : > { %s1150_s27 = scalar_select %p27_p1, %s1067_s20, %s29_s25  }
   0xc   : > { %p1152_p5 = por %p37_p2, %p36_p0  ;;  %p1158_p6 = por %p1381_p4, %p42_p3 }
   0xd   : > { %1384 = sst [smem:[#allocation12_spill]] %s1150_s27  ;;  %p150_p7 = scmp.eq.s32.totalorder %s1134_s22, 1 }
   0xe   : > { %s1385_s28 = scalar_select %p1152_p5, 1, 0 }
   0xf   : > { %s1386_s29 = scalar_select %p1158_p6, 1, 0 }
  0x10   : > { %p156_p8 = scmp.eq.s32.totalorder %s651_s23, 1  ;;  %p652_p9 = scmp.ge.s32.totalorder %s1071_s21, 1 }
  0x11   : > { %p163_p10 = scmp.lt.s32.totalorder %s1071_s21, 3  ;;  %p1165_p11 = por %p150_p7, %p36_p0 }
  0x12   : > { %p1169_p12 = por %p156_p8, %p42_p3  ;;  %s1073_s8 = smov [#allocation5]  }
  0x13   : > { %s1387_s30 = scalar_select %p1165_p11, 1, 0 }
  0x14   : > { %s1388_s6 = scalar_select %p1169_p12, 1, 0 }
  0x15   : > { %p1173_p13 = pnand %p652_p9, %p163_p10  ;;  %s175_s9 = sshll.u32 %s1073_s8, 4  ;;  %s176_s9 = int_to_ptr.vmem [resolvable:$true] %s175_s9 }
  0x16   : > { %s1074_s11 = smov [#allocation7]   ;;  %s917_s15 = scalar_lea.hbm %s1376_s1, 4096 }
  0x17   : > { %s1389_s7 = scalar_select %p1173_p13, 1, 0 }
  0x18   : > { %p861_p1 = pneg %p1173_p13  ;;  %s191_s12 = sshll.u32 %s1074_s11, 4  ;;  %s1185_s12 = int_to_ptr.vmem [resolvable:$true] %s191_s12 }
  0x19   : > { %p918_p0 = scmp.ne.s32.totalorder %s1376_s1, %s917_s15  ;;  %p924_p9 = scmp.lt.u32.totalorder %s917_s15, %s1376_s1 }
  0x1a   : > { %p1181_p2 = pnand %p861_p1, %p1381_p4 }
  0x1c   : > { %p919_p3 = pneg %p1181_p2 }
  0x1e   : > { %p920_p7 = pnand %p919_p3, %p918_p0 }
  0x20   : > { %p921_p8 = pneg %p920_p7 }
  0x22   : > { %p926_p10 = pnand %p924_p9, %p921_p8 }
  0x24   : > { %929 = shalt.err (!%p926_p10)
}
  0x25   : > { %s930_s26 = scalar_lea.vmem %s176_s9, 4096  ;;  %p938_p11 = scmp.lt.s32.totalorder %s176_s9, %s176_s9 }
  0x26   : > { %p931_p1 = scmp.ne.s32.totalorder %s176_s9, %s930_s26  ;;  %p939_p6 = scmp.lt.s32.totalorder %s930_s26, %s930_s26 }
  0x28   : > { %p933_p4 = pnand %p931_p1, %p919_p3  ;;  %p940_p13 = por %p939_p6, %p938_p11 }
  0x2a   : > { %p934_p12 = pneg %p933_p4 }
  0x2c   : > { %p941_p5 = pnand %p940_p13, %p934_p12 }
  0x2e   : > { %944 = shalt.err (!%p941_p5)
}
  0x2f   : > { %s1075_s8 = smov 128   ;;  %s1076_s11 = smov 8  }
  0x30   : > { %864 = dma.hbm_to_vmem [thread:$0]  (!%p1181_p2), %s1376_s1, 4096, %s176_s9, [#allocation6], %s1075_s8, %s1075_s8, %s1076_s11  }
  0x31   : > { %s945_s17 = scalar_lea.hbm %s1378_s3, 2048 }
  0x32   : > { %p946_p4 = scmp.ne.s32.totalorder %s1378_s3, %s945_s17  ;;  %p952_p11 = scmp.lt.u32.totalorder %s945_s17, %s1378_s3 }
  0x34   : > { %p948_p5 = pnand %p946_p4, %p919_p3 }
  0x36   : > { %p949_p6 = pneg %p948_p5 }
  0x38   : > { %p954_p12 = pnand %p952_p11, %p949_p6 }
  0x3a   : > { %957 = shalt.err (!%p954_p12)
}
  0x3b   : > { %s958_s9 = scalar_lea.vmem %s1185_s12, 2048  ;;  %p966_p8 = scmp.lt.s32.totalorder %s1185_s12, %s1185_s12 }
  0x3c   : > { %p959_p13 = scmp.ne.s32.totalorder %s1185_s12, %s958_s9  ;;  %p967_p9 = scmp.lt.s32.totalorder %s958_s9, %s958_s9 }
  0x3e   : > { %p961_p0 = pnand %p959_p13, %p919_p3  ;;  %p968_p10 = por %p967_p9, %p966_p8 }
  0x40   : > { %p962_p7 = pneg %p961_p0 }
  0x42   : > { %p969_p1 = pnand %p968_p10, %p962_p7 }
  0x44   : > { %972 = shalt.err (!%p969_p1)
}
  0x45   : > { %867 = dma.hbm_to_vmem [thread:$0]  (!%p1181_p2), %s1378_s3, 2048, %s1185_s12, [#allocation6], %s1075_s8, %s1075_s8, %s1076_s11  }
  0x46   : > { %p655_p4 = scmp.ge.s32.totalorder %s1071_s21, 2 }
  0x47   : > { %p1391_p3 = scmp.ne.s32.totalorder (!%p655_p4), %s1385_s28, 0 }
  0x48   : > { %204 = sbr.rel (%p655_p4) target bundleno = 114 (0x72), region = 32 }
  0x4f   : > { %207 = sbr.rel (!%p1391_p3) target bundleno = 114 (0x72), region = 36  ;;  %s208_s14 = sand.u32 (%p1391_p3), 1, %s1067_s20  }
  0x50   : > { %s657_s15 = sshll.u32 (%p1391_p3), %s1071_s21, 2  ;;  %s656_s16 = sshll.u32 (%p1391_p3), %s208_s14, 6 }
  0x51   : > { %s214_s17 = ssub.s32 (%p1391_p3), 6, %s657_s15  ;;  %s1244_s8 = scalar_lea.sflag (%p1391_p3), [#allocation3], %s208_s14 }
  0x52   : > { %p215_p5 = scmp.lt.s32.totalorder (%p1391_p3), %s214_s17, 4  ;;  %s212_s11 = scalar_lea.vmem (%p1391_p3), [#allocation2], %s656_s16 }
  0x56   : > { %s1404_s17 = smov (!%p215_p5, %s214_s17), 4 }
  0x57   : > { %s1241_s10 = sshll.u32 %s1404_s17, 8 }
  0x58   : > { %s220_s12 = ssub.s32 1024, %s1241_s10 }
  0x59   : > { %221 = vsyncadd %s1244_s8, %s220_s12  ;;  %p660_p2 = scmp.ne.s32.totalorder %s1241_s10, 0  ;;  %s683_s28 = sshll.u32 %s1071_s21, 10 }
  0x5a   : > { %s1252_s26 = scalar_lea.hbm %s1375_s0, %s683_s28  ;;  %s227_s9 = sshll.u32 %s212_s11, 4  ;;  %s1254_s9 = int_to_ptr.vmem [resolvable:$true] %s227_s9 }
  0x5b   : > { %s973_s27 = scalar_lea.hbm %s1252_s26, %s1241_s10  ;;  %s977_s15 = scalar_lea.hbm %s1375_s0, 1536 }
  0x5c   : > { %p974_p6 = scmp.ne.s32.totalorder %s1252_s26, %s973_s27  ;;  %p978_p13 = scmp.lt.u32.totalorder %s1252_s26, %s1375_s0 }
  0x5d   : > { %p979_p0 = scmp.lt.u32.totalorder %s977_s15, %s973_s27  ;;  %p981_p8 = scmp.lt.u32.totalorder %s973_s27, %s1252_s26 }
  0x5e   : > { %p975_p11 = pnand %p974_p6, %p660_p2 }
  0x5f   : > { %p980_p7 = por %p979_p0, %p978_p13 }
  0x60   : > { %p976_p12 = pneg %p975_p11 }
  0x61   : > { %p982_p9 = por %p981_p8, %p980_p7 }
  0x63   : > { %p983_p10 = pnand %p982_p9, %p976_p12 }
  0x65   : > { %986 = shalt.err (!%p983_p10)
}
  0x66   : > { %s987_s12 = scalar_lea.vmem %s1254_s9, %s1241_s10  ;;  %s1077_s11 = smov [#allocation2]  }
  0x67   : > { %p988_p1 = scmp.ne.s32.totalorder %s1254_s9, %s987_s12  ;;  %s991_s28 = sshll.u32 %s1077_s11, 4  ;;  %s992_s28 = int_to_ptr.vmem [resolvable:$false] %s991_s28 }
  0x68   : > { %s993_s23 = scalar_lea.vmem %s992_s28, 2048  ;;  %p994_p6 = scmp.lt.s32.totalorder %s1254_s9, %s992_s28 }
  0x69   : > { %p989_p3 = pnand %p988_p1, %p660_p2  ;;  %p995_p11 = scmp.lt.s32.totalorder %s993_s23, %s987_s12 }
  0x6b   : > { %p990_p5 = pneg %p989_p3  ;;  %p996_p13 = por %p995_p11, %p994_p6 }
  0x6d   : > { %p997_p0 = pnand %p996_p13, %p990_p5 }
  0x6f   : > { %1000 = shalt.err (!%p997_p0)
}
  0x70   : > { %s1078_s25 = smov 256   ;;  %s1079_s27 = smov 16  }
  0x71   : > { %233 = dma.hbm_to_vmem [thread:$0]  (%p660_p2), %s1252_s26, %s1241_s10, %s1254_s9, %s1244_s8, %s1078_s25, %s1078_s25, %s1079_s27  }
  0x72 PF: > { %p1392_p12 = scmp.ne.s32.totalorder %s1389_s7, 0 }
  0x73   : > { %s1284_s13 = sand.u32 (!%p1392_p12), 1, %s1063_s19   ;;  %p1393_p7 = scmp.ne.s32.totalorder (!%p1392_p12), %s1386_s29, 0 }
  0x74   : > { %239 = sbr.rel (%p1392_p12) target bundleno = 637 (0x27d), region = 40  ;;  %s666_s14 = sshll.u32 (!%p1392_p12), %s1284_s13, 6 }
  0x75   : > { %s242_s15 = scalar_lea.sflag (!%p1392_p12), [#allocation3], %s1284_s13  ;;  %s1288_s16 = scalar_lea.vmem (!%p1392_p12), [#allocation2], %s666_s14 }
  0x7b   : > { %1046 = dma.done.wait (%p1393_p7), %s242_s15, 1024  }
  0x7c   : > { %1048 = vsyncadd (%p1393_p7), %s242_s15, 4294966272  ;;  %p1394_p2 = scmp.eq.s32.totalorder %s1134_s22, 0 }
  0x7e   : > { %1050 = dma.done.wait (%p1394_p2), [#allocation6], 6144   ;;  %p1395_p8 = pmov %p1394_p2 }
  0x7f   : > { %v315_v0 = vld [vmem:[#allocation5 + $0x80] sm:$0xff]  ;;  %v316_v1 = vld [vmem:[#allocation5 + $0x88] sm:$0xff]  ;;  %v317_v5 = vld [vmem:[#allocation5 + $0x90] sm:$0xff]  ;;  %s669_s10 = sshll.u32 %s1284_s13, 5  ;;  %s540_s17 = scalar_lea.sflag [#allocation4], %s1284_s13 }
  0x80   : > { %1052 = vsyncadd (%p1395_p8), [#allocation6], 4294961152  ;;  %v299_v2 = vld [vmem:[#allocation5] sm:$0xff]  ;;  %v787_v3 = vpack.c.bf16 %v316_v1, %v315_v0  ;;  %v300_v4 = vld [vmem:[#allocation5 + $0x8] sm:$0xff]  ;;  %s279_s9 = scalar_lea.vmem [#allocation8], %s669_s10  ;;  %p1396_p9 = scmp.ne.s32.totalorder %s1387_s30, 0 }
  0x81   : > { %v318_v6 = vld [vmem:[#allocation5 + $0x98] sm:$0xff]  ;;  %v789_v7 = vpack.c.bf16 %v300_v4, %v299_v2  ;;  %v301_v9 = vld [vmem:[#allocation5 + $0x10] sm:$0xff]  ;;  %v319_v11 = vld [vmem:[#allocation5 + $0xa0] sm:$0xff]  ;;  %s673_s12 = sshll.u32 (%p1396_p9), %s1134_s22, 2 }
  0x82   : > { %v791_v8 = vpack.c.bf16 %v318_v6, %v317_v5  ;;  %v302_v10 = vld [vmem:[#allocation5 + $0x18] sm:$0xff]  ;;  %788 = vmatprep.subr.bf16.mxu0 %v787_v3  ;;  %v320_v12 = vld [vmem:[#allocation5 + $0xa8] sm:$0xff]  ;;  %v303_v15 = vld [vmem:[#allocation5 + $0x20] sm:$0xff]  ;;  %s548_s11 = ssub.s32 (%p1396_p9), 6, %s673_s12 }
  0x83   : > { %790 = vmatpush3.bf16.msra.mxu0 %v789_v7  ;;  %v793_v13 = vpack.c.bf16 %v302_v10, %v301_v9  ;;  %v795_v14 = vpack.c.bf16 %v320_v12, %v319_v11  ;;  %v304_v16 = vld [vmem:[#allocation5 + $0x28] sm:$0xff]  ;;  %v321_v17 = vld [vmem:[#allocation5 + $0xb0] sm:$0xff]  ;;  %v322_v18 = vld [vmem:[#allocation5 + $0xb8] sm:$0xff]  ;;  %p549_p10 = scmp.lt.s32.totalorder (%p1396_p9), %s548_s11, 4 }
  0x84   : > { %792 = vmatprep.subr.bf16.mxu0 %v791_v8  ;;  %v797_v19 = vpack.c.bf16 %v304_v16, %v303_v15  ;;  %v799_v20 = vpack.c.bf16 %v322_v18, %v321_v17  ;;  %v305_v21 = vld [vmem:[#allocation5 + $0x30] sm:$0xff]  ;;  %v306_v22 = vld [vmem:[#allocation5 + $0x38] sm:$0xff]  ;;  %v323_v23 = vld [vmem:[#allocation5 + $0xc0] sm:$0xff] }
  0x85   : > { %v324_v24 = vld [vmem:[#allocation5 + $0xc8] sm:$0xff]  ;;  %v801_v26 = vpack.c.bf16 %v306_v22, %v305_v21  ;;  %v307_v27 = vld [vmem:[#allocation5 + $0x40] sm:$0xff]  ;;  %v325_v30 = vld [vmem:[#allocation5 + $0xd0] sm:$0xff] }
  0x86   : > { %v292_v25 = vld [vmem:[%s1288_s16 + $0x8] sm:$0xff]  ;;  %v803_v29 = vpack.c.bf16 %v324_v24, %v323_v23  ;;  %v427_v31 = vld [vmem:[#allocation7] sm:$0xff]  ;;  %v326_v33 = vld [vmem:[#allocation5 + $0xd8] sm:$0xff] }
  0x87   : > { %794 = vmatpush3.bf16.msra.mxu0 %v793_v13  ;;  %402 = vmatprep.mubr.f32.mxu0 %v292_v25  ;;  %v308_v28 = vld [vmem:[#allocation5 + $0x48] sm:$0xff]  ;;  %v429_v35 = vld [vmem:[#allocation7 + $0x10] sm:$0xff]  ;;  %v430_v36 = vld [vmem:[#allocation7 + $0x18] sm:$0xff]  ;;  %v807_v41 = vpack.c.bf16 %v326_v33, %v325_v30 }
  0x88   : > { %796 = vmatprep.subr.bf16.mxu0 %v795_v14  ;;  %v428_v32 = vld [vmem:[#allocation7 + $0x8] sm:$0xff]  ;;  %v823_v37 = vpack.c.bf16 %v430_v36, %v429_v35  ;;  %v431_v38 = vld [vmem:[#allocation7 + $0x20] sm:$0xff]  ;;  %v805_v40 = vpack.c.bf16 %v308_v28, %v307_v27  ;;  %v309_v42 = vld [vmem:[#allocation5 + $0x50] sm:$0xff] }
  0x89   : > { %v819_v34 = vpack.c.bf16 %v428_v32, %v427_v31  ;;  %v432_v39 = vld [vmem:[#allocation7 + $0x28] sm:$0xff]  ;;  %v310_v43 = vld [vmem:[#allocation5 + $0x58] sm:$0xff]  ;;  %v327_v44 = vld [vmem:[#allocation5 + $0xe0] sm:$0xff] }
  0x8a   : > { %v328_v45 = vld [vmem:[#allocation5 + $0xe8] sm:$0xff]  ;;  %v827_v46 = vpack.c.bf16 %v432_v39, %v431_v38  ;;  %v433_v47 = vld [vmem:[#allocation7 + $0x30] sm:$0xff]  ;;  %v434_v48 = vld [vmem:[#allocation7 + $0x38] sm:$0xff]  ;;  %v809_v49 = vpack.c.bf16 %v310_v43, %v309_v42 }
  0x8b   : > { %798 = vmatpush3.bf16.msra.mxu0 %v797_v19  ;;  %820 = vmatprep.subr.bf16.mxu1 %v819_v34  ;;  %v811_v50 = vpack.c.bf16 %v328_v45, %v327_v44  ;;  %v311_v51 = vld [vmem:[#allocation5 + $0x60] sm:$0xff]  ;;  %v312_v52 = vld [vmem:[#allocation5 + $0x68] sm:$0xff]  ;;  %v329_v53 = vld [vmem:[#allocation5 + $0xf0] sm:$0xff]  ;;  %v831_v55 = vpack.c.bf16 %v434_v48, %v433_v47 }
  0x8c   : > { %800 = vmatprep.subr.bf16.mxu0 %v799_v20  ;;  %822 = vmatpush3.bf16.msra.mxu1 %v819_v34  ;;  %v330_v54 = vld [vmem:[#allocation5 + $0xf8] sm:$0xff]  ;;  %v435_v56 = vld [vmem:[#allocation7 + $0x40] sm:$0xff]  ;;  %v436_v57 = vld [vmem:[#allocation7 + $0x48] sm:$0xff]  ;;  %v813_v58 = vpack.c.bf16 %v312_v52, %v311_v51 }
  0x8d   : > { %824 = vmatprep.subr.bf16.mxu1 %v823_v37  ;;  %v815_v59 = vpack.c.bf16 %v330_v54, %v329_v53  ;;  %v313_v60 = vld [vmem:[#allocation5 + $0x70] sm:$0xff]  ;;  %v314_v61 = vld [vmem:[#allocation5 + $0x78] sm:$0xff]  ;;  %v835_v62 = vpack.c.bf16 %v436_v57, %v435_v56  ;;  %v291_v0 = vld [vmem:[%s1288_s16] sm:$0xff] }
  0x8e   : > { %v817_v63 = vpack.c.bf16 %v314_v61, %v313_v60  ;;  %v294_v1 = vld [vmem:[%s1288_s16 + $0x18] sm:$0xff]  ;;  %v293_v2 = vld [vmem:[%s1288_s16 + $0x10] sm:$0xff]  ;;  %v296_v3 = vld [vmem:[%s1288_s16 + $0x28] sm:$0xff] }
  0x8f   : > { %802 = vmatpush3.bf16.msra.mxu0 %v801_v26  ;;  %v295_v4 = vld [vmem:[%s1288_s16 + $0x20] sm:$0xff]  ;;  %v298_v5 = vld [vmem:[%s1288_s16 + $0x38] sm:$0xff]  ;;  %v297_v6 = vld [vmem:[%s1288_s16 + $0x30] sm:$0xff] }
  0x90   : > { %804 = vmatprep.subr.bf16.mxu0 %v803_v29  ;;  %826 = vmatpush3.bf16.msra.mxu1 %v823_v37  ;;  %v437_v7 = vld [vmem:[#allocation7 + $0x50] sm:$0xff]  ;;  %v438_v8 = vld [vmem:[#allocation7 + $0x58] sm:$0xff]  ;;  %v439_v10 = vld [vmem:[#allocation7 + $0x60] sm:$0xff] }
  0x91   : > { %828 = vmatprep.subr.bf16.mxu1 %v827_v46  ;;  %v839_v9 = vpack.c.bf16 %v438_v8, %v437_v7  ;;  %v440_v11 = vld [vmem:[#allocation7 + $0x68] sm:$0xff]  ;;  %v441_v13 = vld [vmem:[#allocation7 + $0x70] sm:$0xff]  ;;  %v442_v14 = vld [vmem:[#allocation7 + $0x78] sm:$0xff] }
  0x92   : > { %v843_v12 = vpack.c.bf16 %v440_v11, %v439_v10  ;;  %v847_v15 = vpack.c.bf16 %v442_v14, %v441_v13  ;;  %v670_v18 = vld [vmem:[%s1377_s2] ss:$0 sm:$0xff] }
  0x93   : > { %806 = vmatpush3.bf16.msra.mxu0 %v805_v40  ;;  %v671_v37 = vld [vmem:[%s1379_s4] ss:$0 sm:$0xff] }
  0x94   : > { %808 = vmatprep.subr.bf16.mxu0 %v807_v41  ;;  %830 = vmatpush3.bf16.msra.mxu1 %v827_v46 }
  0x95   : > { %832 = vmatprep.subr.bf16.mxu1 %v831_v55 }
  0x97   : > { %810 = vmatpush3.bf16.msra.mxu0 %v809_v49 }
  0x98   : > { %812 = vmatprep.subr.bf16.mxu0 %v811_v50  ;;  %834 = vmatpush3.bf16.msra.mxu1 %v831_v55 }
  0x99   : > { %836 = vmatprep.subr.bf16.mxu1 %v835_v62 }
  0x9b   : > { %814 = vmatpush3.bf16.msra.mxu0 %v813_v58 }
  0x9c   : > { %816 = vmatprep.subr.bf16.mxu0 %v815_v59  ;;  %838 = vmatpush3.bf16.msra.mxu1 %v835_v62 }
  0x9d   : > { %840 = vmatprep.subr.bf16.mxu1 %v839_v9 }
  0x9f   : > { %818 = vmatpush3.bf16.msra.mxu0 %v817_v63 }
  0xa0   : > { %842 = vmatpush3.bf16.msra.mxu1 %v839_v9 }
  0xa1   : > { %844 = vmatprep.subr.bf16.mxu1 %v843_v12 }
  0xa2   : > { %403 = vmatmul.mubr.f32.vlgmr.msra.gmra.mrb[0].mxu0 %v291_v0 }
  0xa3   : > { %407 = vmatprep.mubr.f32.mxu0 %v294_v1 }
  0xa4   : > { %846 = vmatpush3.bf16.msra.mxu1 %v843_v12 }
  0xa5   : > { %848 = vmatprep.subr.bf16.mxu1 %v847_v15 }
  0xa6   : > { %408 = vmatmul.mubr.f32.gmra.mrb[2].mxu0 %v293_v2 }
  0xa7   : > { %412 = vmatprep.mubr.f32.mxu0 %v296_v3 }
  0xa8   : > { %850 = vmatpush3.bf16.msra.mxu1 %v847_v15 }
  0xaa   : > { %413 = vmatmul.mubr.f32.gmra.mrb[4].mxu0 %v295_v4 }
  0xab   : > { %417 = vmatprep.mubr.f32.mxu0 %v298_v5 }
  0xae   : > { %418 = vmatmul.mubr.f32.gmra.mrb[6].mxu0 %v297_v6 }
 0x175   : > { %v717_v16 = vpop.f32.mrb[0].mxu0 }
 0x176   : > { %v718_v17 = vpop.f32.mrb[1].mxu0 }
 0x177   : > { %v719_v19 = vadd.f32 %v718_v17, %v717_v16 }
 0x179   : > { %v720_v20 = vpop.f32.mrb[2].mxu0  ;;  %v405_v21 = vadd.f32 %v719_v19, %v670_v18 }
 0x17a   : > { %v721_v22 = vpop.f32.mrb[3].mxu0 }
 0x17b   : > { %v722_v23 = vadd.f32 %v721_v22, %v720_v20  ;;  %v423_v24 = vmax.f32 %v405_v21, 0.0 }
 0x17d   : > { %v410_v25 = vadd.f32 %v722_v23, %v670_v18  ;;  %v723_v26 = vpop.f32.mrb[4].mxu0  ;;  %781 = vmatprep.mubr.f32.mxu1 %v423_v24 }
 0x17e   : > { %v724_v27 = vpop.f32.mrb[5].mxu0 }
 0x17f   : > { %v424_v28 = vmax.f32 %v410_v25, 0.0  ;;  %v725_v29 = vadd.f32 %v724_v27, %v723_v26 }
 0x181   : > { %v415_v30 = vadd.f32 %v725_v29, %v670_v18  ;;  %v726_v31 = vpop.f32.mrb[6].mxu0  ;;  %782 = vmatmul.mubr.f32.vlgmr.msra.gmra.mrb[0].mxu1 %v424_v28 }
 0x182   : > { %v727_v32 = vpop.f32.mrb[7].mxu0 }
 0x183   : > { %v425_v33 = vmax.f32 %v415_v30, 0.0  ;;  %v728_v34 = vadd.f32 %v727_v32, %v726_v31 }
 0x185   : > { %v420_v35 = vadd.f32 %v728_v34, %v670_v18  ;;  %784 = vmatprep.mubr.f32.mxu1 %v425_v33 }
 0x187   : > { %v426_v36 = vmax.f32 %v420_v35, 0.0 }
 0x189   : > { %785 = vmatmul.mubr.f32.gmra.mrb[2].mxu1 %v426_v36 }
 0x254   : > { %v783_v38 = vpop.f32.mrb[0].mxu1 }
 0x255   : > { %v522_v39 = vadd.f32 %v783_v38, %v671_v37  ;;  %v516_v40 = vpop.f32.mrb[1].mxu1 }
 0x256   : > { %v517_v41 = vadd.f32 %v671_v37, %v516_v40 }
 0x257   : > { %536 = vst [vmem:[%s279_s9 + $0x8] sm:$0xff] %v522_v39 }
 0x258   : > { %535 = vst [vmem:[%s279_s9] sm:$0xff] %v517_v41 }
 0x25a   : > { %546 = sbr.rel (!%p1396_p9) target bundleno = 637 (0x27d), region = 56 }
 0x25c   : > { %v786_v42 = vpop.f32.mrb[2].mxu1 }
 0x25d   : > { %v532_v43 = vadd.f32 %v786_v42, %v671_v37  ;;  %v526_v44 = vpop.f32.mrb[3].mxu1 }
 0x25e   : > { %v527_v45 = vadd.f32 %v671_v37, %v526_v44 }
 0x25f   : > { %538 = vst [vmem:[%s279_s9 + $0x18] sm:$0xff] %v532_v43 }
 0x260   : > { %537 = vst [vmem:[%s279_s9 + $0x10] sm:$0xff] %v527_v45 }
 0x261   : > { %s1406_s11 = smov (!%p549_p10, %s548_s11), 4 }
 0x262   : > { %s1317_s28 = sshll.u32 %s1406_s11, 7 }
 0x263   : > { %s553_s23 = ssub.s32 512, %s1317_s28 }
 0x264   : > { %554 = vsyncadd %s540_s17, %s553_s23  ;;  %p675_p1 = scmp.ne.s32.totalorder %s1317_s28, 0  ;;  %s684_s25 = sshll.u32 %s1134_s22, 9 }
 0x265   : > { %s1327_s14 = scalar_lea.hbm %s1380_s5, %s684_s25  ;;  %s559_s15 = sshll.u32 %s279_s9, 4  ;;  %s1329_s15 = int_to_ptr.vmem [resolvable:$true] %s559_s15 }
 0x266   : > { %s1001_s16 = scalar_lea.vmem %s1329_s15, %s1317_s28  ;;  %s1080_s29 = smov [#allocation8]  }
 0x267   : > { %p1002_p3 = scmp.ne.s32.totalorder %s1329_s15, %s1001_s16  ;;  %s1005_s7 = sshll.u32 %s1080_s29, 4  ;;  %s1006_s7 = int_to_ptr.vmem [resolvable:$false] %s1005_s7 }
 0x268   : > { %s1007_s22 = scalar_lea.vmem %s1006_s7, 1024  ;;  %p1008_p11 = scmp.lt.s32.totalorder %s1329_s15, %s1006_s7 }
 0x269   : > { %p1003_p5 = pnand %p1002_p3, %p675_p1  ;;  %p1009_p13 = scmp.lt.s32.totalorder %s1007_s22, %s1001_s16 }
 0x26b   : > { %p1004_p6 = pneg %p1003_p5  ;;  %p1010_p0 = por %p1009_p13, %p1008_p11 }
 0x26d   : > { %p1011_p12 = pnand %p1010_p0, %p1004_p6 }
 0x26f   : > { %1014 = shalt.err (!%p1011_p12)
}
 0x270   : > { %s1015_s10 = scalar_lea.hbm %s1327_s14, %s1317_s28  ;;  %s1019_s9 = scalar_lea.hbm %s1380_s5, 768 }
 0x271   : > { %p1016_p7 = scmp.ne.s32.totalorder %s1327_s14, %s1015_s10  ;;  %p1020_p9 = scmp.lt.u32.totalorder %s1327_s14, %s1380_s5 }
 0x272   : > { %p1021_p10 = scmp.lt.u32.totalorder %s1019_s9, %s1015_s10  ;;  %p1023_p5 = scmp.lt.u32.totalorder %s1015_s10, %s1327_s14 }
 0x273   : > { %p1017_p2 = pnand %p1016_p7, %p675_p1 }
 0x274   : > { %p1022_p3 = por %p1021_p10, %p1020_p9 }
 0x275   : > { %p1018_p8 = pneg %p1017_p2 }
 0x276   : > { %p1024_p6 = por %p1023_p5, %p1022_p3 }
 0x278   : > { %p1025_p11 = pnand %p1024_p6, %p1018_p8 }
 0x27a   : > { %1028 = shalt.err (!%p1025_p11)
}
 0x27b   : > { %s1081_s23 = smov 128   ;;  %s1082_s25 = smov 8  }
 0x27c   : > { %565 = dma.vmem_to_hbm [thread:$0]  (%p675_p1), %s1329_s15, %s1317_s28, %s1327_s14, %s540_s17, %s1081_s23, %s1081_s23, %s1082_s25  }
 0x27d PF: > { %s574_s30 = sand.u32 1, %s1059_s18   ;;  %p1397_p13 = scmp.ne.s32.totalorder %s1388_s6, 0 }
 0x27e   : > { %s575_s27 = scalar_lea.sflag [#allocation4], %s574_s30 }
 0x27f   : > { %p869_p0 = pnand %p655_p4, %p1397_p13 }
 0x281   : > { %1054 = dma.done.wait (!%p869_p0), %s575_s27, 512  }
 0x282   : > { %1056 = vsyncadd (!%p869_p0), %s575_s27, 4294966784  ;;  %s1398_s16 = sld [smem:[#allocation12_spill]]  ;;  %p19_p12 = scmp.ge.s32.totalorder %s1138_s24, 4  }
 0x283   : > { %s1399_s18 = smov %s1063_s19  ;;  %s1400_s19 = smov %s1067_s20 }
 0x284   : > { %s1402_s21 = smov %s1138_s24  ;;  %21 = sbr.rel (!%p19_p12) target bundleno = 6 (0x6), region = 93 }
 0x288   : > { %s1401_s20 = smov %s1398_s16 }
 0x28b   :  { %580 = vsyncpa [#allocation3], 1 }
 0x28c   :  { %582 = vsyncpa [#allocation3 + $0x1], 1 }
 0x28d   :  { %583 = vsyncpa [#allocation6], 1 }
 0x28e   :  { %584 = vsyncpa [#allocation4], 1 }
 0x28f   :  { %586 = vsyncpa [#allocation4 + $0x1], 1 }

</bundles_post_ra>
